<compile_context>
chip_gen: v7x
topology: tpu7x:2x2x1
jax: 0.10.0
libtpu: 0.0.40
codegen_flags: <defaults>
</compile_context>

<pallas_src>
import jax
import jax.numpy as jnp
from jax.experimental import pallas as pl
from jax.experimental.pallas import tpu as pltpu

LANE = 128          # TPU lane width
TB_MAX = 64 * 1024  # max batch-tile (lanes); ~12.6 MiB double-buffered VMEM


def fm_kernel(xt_ref, p_ref, o_ref):
    """FM forward with batch on the lane axis.

    xt_ref: (F, TB)    features on sublanes, batch on lanes
    p_ref : (F, K+2)   packed params: [:,0]=w, [:,1]=0.5*sum_k v**2, [:,2:]=v
    o_ref : (1, TB)    lane-dense output tile
    """
    xt = xt_ref[...]                                    # (F, TB)
    w = p_ref[:, 0:1]                                   # (F, 1)
    hs = p_ref[:, 1:2]                                  # (F, 1) = 0.5 * sum_k v^2

    # Fused linear term + "square-of-features" half of the interaction:
    #   x@w - 0.5*(x**2 @ s) = sum_f x_f * (w_f - 0.5*s_f*x_f)   -> (1, TB)
    base = jnp.sum(xt * (w - hs * xt), axis=0, keepdims=True)

    # 0.5 * sum_k (x @ v[:, k])**2, K unrolled statically (K is tiny).
    num_factors = p_ref.shape[1] - 2
    sq = jnp.zeros_like(base)
    for k in range(num_factors):
        xv = jnp.sum(xt * p_ref[:, 2 + k:3 + k], axis=0, keepdims=True)
        sq = sq + xv * xv

    o_ref[...] = (base + 0.5 * sq).astype(o_ref.dtype)


def _round_up(a, m):
    return pl.cdiv(a, m) * m


def fm_forward(x, w, v, *, tb=None):
    """Pallas FM forward. x: (B, F), w: (F,), v: (F, K) -> (B,)."""
    B, F = x.shape
    K = v.shape[1]

    xf = x.astype(jnp.float32)
    wf = w.astype(jnp.float32).reshape(F, 1)
    vf = v.astype(jnp.float32)
    half_s = 0.5 * jnp.sum(vf * vf, axis=1, keepdims=True)      # (F, 1)
    params = jnp.concatenate([wf, half_s, vf], axis=1)          # (F, K+2)

    b128 = _round_up(B, LANE)
    if tb is None:
        n_tiles = pl.cdiv(b128, TB_MAX)
        # Even number of tiles when gridded so v7x's 2 TensorCores stay busy.
        if n_tiles > 1 and n_tiles % 2 == 1:
            n_tiles += 1
        tb = _round_up(pl.cdiv(b128, n_tiles), LANE)
    else:
        # Robustness: clamp user-supplied tb to a lane-aligned value <= b128.
        tb = min(_round_up(max(int(tb), 1), LANE), b128)
    n_tiles = pl.cdiv(b128, tb)
    b_pad = n_tiles * tb

    # Batch-on-lanes layout; only a small zero sliver of padding is added
    # (padded columns produce garbage-free zeros and are sliced off below).
    xt = xf.T                                                    # (F, B)
    if b_pad != B:
        xt = jnp.pad(xt, ((0, 0), (0, b_pad - B)))

    out = pl.pallas_call(
        fm_kernel,
        out_shape=jax.ShapeDtypeStruct((1, b_pad), jnp.float32),
        grid=(n_tiles,),
        in_specs=[
            pl.BlockSpec((F, tb), lambda i: (0, i)),        # x tile (batch on lanes)
            pl.BlockSpec((F, K + 2), lambda i: (0, 0)),     # packed params, resident
        ],
        out_specs=pl.BlockSpec((1, tb), lambda i: (0, i)),  # lane-dense output
        compiler_params=pltpu.CompilerParams(
            dimension_semantics=("parallel",),
            vmem_limit_bytes=32 * 1024 * 1024,
        ),
    )(xt, params)
    return out[0, :B]


def fm_forward_ref(x, w, v):
    """Pure-JAX reference matching the PyTorch module exactly."""
    linear = x @ w
    inter = 0.5 * jnp.sum((x @ v) ** 2 - (x**2) @ (v**2), axis=1, keepdims=True)
    return linear + inter[:, 0]


if __name__ == "__main__":
    num_features = 11   # matches FactorizationMachine(11, 2)
    num_factors = 2
    batch = 16          # small (user, item) combined feature rows

    key = jax.random.PRNGKey(0)
    kx, kw, kv, kx2 = jax.random.split(key, 4)

    # Deterministic synthetic parameters (torch.randn equivalents).
    w = jax.random.normal(kw, (num_features,), dtype=jnp.float32)
    v = jax.random.normal(kv, (num_features, num_factors), dtype=jnp.float32)

    # Input rows, L2-normalized like normalize(combined_features) in the module.
    x = jax.random.normal(kx, (batch, num_features), dtype=jnp.float32)
    x = x / jnp.linalg.norm(x, axis=1, keepdims=True)

    y = jax.block_until_ready(fm_forward(x, w, v))
    y_ref = fm_forward_ref(x, w, v)
    assert y.shape == (batch,)
    assert jnp.allclose(y, y_ref, atol=1e-5, rtol=1e-5), (y, y_ref)

    # Second check: non-multiple batch with a multi-step (gridded) launch.
    batch2 = 300
    x2 = jax.random.normal(kx2, (batch2, num_features), dtype=jnp.float32)
    x2 = x2 / jnp.linalg.norm(x2, axis=1, keepdims=True)
    y2 = jax.block_until_ready(fm_forward(x2, w, v, tb=128))   # grid of 3 tiles
    y2_ref = fm_forward_ref(x2, w, v)
    assert y2.shape == (batch2,)
    assert jnp.allclose(y2, y2_ref, atol=1e-5, rtol=1e-5), (y2, y2_ref)

    print("KERNEL_OK")
</pallas_src>

<mosaic_0001>
module attributes {stable_mosaic.version = 11 : i64} {
  func.func @fm_kernel(%arg0: i32, %arg1: memref<11x128xf32, #tpu.memory_space<vmem>>, %arg2: memref<11x4xf32, #tpu.memory_space<vmem>>, %arg3: memref<1x128xf32, #tpu.memory_space<vmem>>) attributes {dimension_semantics = [#tpu.dimension_semantics<parallel>], iteration_bounds = array<i64: 1>, scalar_prefetch = 0 : i64, scratch_operands = 0 : i64, tpu.core_type = #tpu.core_type<tc>, window_params = [{transform_indices = @transform_0, window_bounds = array<i64: 11, 128>}, {pipeline_mode = #tpu.pipeline_mode<synchronous>, transform_indices = @transform_1, window_bounds = array<i64: 11, 4>}, {transform_indices = @transform_2, window_bounds = array<i64: 1, 128>}]} {
    %c0 = arith.constant 0 : index
    %c0_0 = arith.constant 0 : index
    %0 = vector.load %arg1[%c0, %c0_0] : memref<11x128xf32, #tpu.memory_space<vmem>>, vector<11x128xf32>
    %c0_1 = arith.constant 0 : index
    %c0_2 = arith.constant 0 : index
    %1 = vector.load %arg2[%c0_1, %c0_2] : memref<11x4xf32, #tpu.memory_space<vmem>>, vector<11x1xf32>
    %c0_3 = arith.constant 0 : index
    %c1 = arith.constant 1 : index
    %2 = vector.load %arg2[%c0_3, %c1] : memref<11x4xf32, #tpu.memory_space<vmem>>, vector<11x1xf32>
    %3 = vector.broadcast %2 : vector<11x1xf32> to vector<11x128xf32>
    %4 = arith.mulf %3, %0 : vector<11x128xf32>
    %5 = vector.broadcast %1 : vector<11x1xf32> to vector<11x128xf32>
    %6 = arith.subf %5, %4 : vector<11x128xf32>
    %7 = arith.mulf %0, %6 : vector<11x128xf32>
    %cst = arith.constant dense<0.000000e+00> : vector<128xf32>
    %8 = vector.multi_reduction <add>, %7, %cst [0] : vector<11x128xf32> to vector<128xf32>
    %9 = vector.shape_cast %8 : vector<128xf32> to vector<1x128xf32>
    %cst_4 = arith.constant 0.000000e+00 : f32
    %10 = vector.broadcast %cst_4 : f32 to vector<1x128xf32>
    %c0_5 = arith.constant 0 : index
    %c2 = arith.constant 2 : index
    %11 = vector.load %arg2[%c0_5, %c2] : memref<11x4xf32, #tpu.memory_space<vmem>>, vector<11x1xf32>
    %12 = vector.broadcast %11 : vector<11x1xf32> to vector<11x128xf32>
    %13 = arith.mulf %0, %12 : vector<11x128xf32>
    %cst_6 = arith.constant dense<0.000000e+00> : vector<128xf32>
    %14 = vector.multi_reduction <add>, %13, %cst_6 [0] : vector<11x128xf32> to vector<128xf32>
    %15 = vector.shape_cast %14 : vector<128xf32> to vector<1x128xf32>
    %16 = arith.mulf %15, %15 : vector<1x128xf32>
    %17 = arith.addf %10, %16 : vector<1x128xf32>
    %c0_7 = arith.constant 0 : index
    %c3 = arith.constant 3 : index
    %18 = vector.load %arg2[%c0_7, %c3] : memref<11x4xf32, #tpu.memory_space<vmem>>, vector<11x1xf32>
    %19 = vector.broadcast %18 : vector<11x1xf32> to vector<11x128xf32>
    %20 = arith.mulf %0, %19 : vector<11x128xf32>
    %cst_8 = arith.constant dense<0.000000e+00> : vector<128xf32>
    %21 = vector.multi_reduction <add>, %20, %cst_8 [0] : vector<11x128xf32> to vector<128xf32>
    %22 = vector.shape_cast %21 : vector<128xf32> to vector<1x128xf32>
    %23 = arith.mulf %22, %22 : vector<1x128xf32>
    %24 = arith.addf %17, %23 : vector<1x128xf32>
    %cst_9 = arith.constant 5.000000e-01 : f32
    %25 = vector.broadcast %cst_9 : f32 to vector<1x128xf32>
    %26 = arith.mulf %25, %24 : vector<1x128xf32>
    %27 = arith.addf %9, %26 : vector<1x128xf32>
    %c0_10 = arith.constant 0 : index
    %c0_11 = arith.constant 0 : index
    %28 = vector.load %arg3[%c0_10, %c0_11] : memref<1x128xf32, #tpu.memory_space<vmem>>, vector<1x128xf32>
    tpu.vector_store %arg3[%c0_10, %c0_11], %27 {strides = array<i32>} : memref<1x128xf32, #tpu.memory_space<vmem>>, vector<1x128xf32>,
    return
  }
  func.func @transform_0(%arg0: i32) -> (i32, i32) {
    %c0_i32 = arith.constant 0 : i32
    %c0_i32_0 = arith.constant 0 : i32
    return %c0_i32, %arg0 : i32, i32
  }
  func.func @transform_1(%arg0: i32) -> (i32, i32) {
    %c0_i32 = arith.constant 0 : i32
    %c0_i32_0 = arith.constant 0 : i32
    %c0_i32_1 = arith.constant 0 : i32
    return %c0_i32, %c0_i32_0 : i32, i32
  }
  func.func @transform_2(%arg0: i32) -> (i32, i32) {
    %c0_i32 = arith.constant 0 : i32
    %c0_i32_0 = arith.constant 0 : i32
    return %c0_i32, %arg0 : i32, i32
  }
}

</mosaic_0001>

<bundles_post_ra>
// kernel: tpu_custom_call.1
= control target key start
LH: loop header
LB: loop body
LE: loop exit
PB: predicated region body
PF: predicated region fallthrough
CT: control target
= control target key end

     0   :  { %v143_v2 = vmov 2   ;;  %s190_s0 = inlined_call_operand.vmem [shape: f32[11,128], index: 0, kind: input, shape index: {}]   ;;  %s191_s1 = inlined_call_operand.vmem [shape: f32[11,4], index: 1, kind: input, shape index: {}]   ;;  %s192_s2 = inlined_call_operand.hbm [shape: f32[1,128], index: 2, kind: output, shape index: {}]  }
   0x1   :  { %v15_v0 = vld [vmem:[%s191_s1 + $0x8] sm:$0x7]  ;;  %v14_v1 = vld [vmem:[%s191_s1] sm:$0xff]  ;;  %113 = vset.pattern.permute.xlu1 %v143_v2  ;;  %111 = vset.pattern.permute.xlu0 %v143_v2 }
   0x2   :  { %54 = vperm.xlu0 %111, %v15_v0   ;;  %50 = vperm.xlu1 %113, %v14_v1  }
   0x3   :  { %7 = vsyncpa [#allocation3], 0  ;;  %v144_v3 = vmov 3   ;;  %v145_v4 = vmov 1   ;;  %v146_v5 = vmov 0   ;;  %v12_v7 = vld [vmem:[%s190_s0] sm:$0xff] }
   0x4   :  { %v13_v6 = vld [vmem:[%s190_s0 + $0x8] sm:$0x7]  ;;  %vm40_vm0 = vcmask 1042432   ;;  %s147_s0 = smov [#allocation2]  }
   0x5   :  { %s98_s16 = sshll.u32 %s147_s0, 4  ;;  %s99_s16 = int_to_ptr.vmem [resolvable:$true] %s98_s16 }
   0x6   :  { %112 = vset.pattern.permute.xlu0 %v144_v3  ;;  %114 = vset.pattern.permute.xlu1 %v144_v3  ;;  %s119_s17 = scalar_lea.vmem %s99_s16, 16  ;;  %s123_s18 = scalar_lea.vmem %s99_s16, 32 }
   0x7   :  { %74 = vperm.xlu0 %112, %v15_v0   ;;  %70 = vperm.xlu1 %114, %v14_v1   ;;  %p120_p0 = scmp.ne.s32.totalorder %s99_s16, %s119_s17  ;;  %p124_p1 = scmp.lt.s32.totalorder %s99_s16, %s99_s16 }
   0x8   :  { %p125_p2 = scmp.lt.s32.totalorder %s123_s18, %s119_s17 }
   0xa   :  { %p126_p3 = por %p125_p2, %p124_p1 }
   0xb   :  { %115 = vset.pattern.permute.xlu1 %v145_v4  ;;  %116 = vset.pattern.permute.xlu0 %v145_v4 }
   0xc   :  { %23 = vperm.xlu1 %115, %v15_v0   ;;  %18 = vperm.xlu0 %116, %v14_v1   ;;  %p127_p4 = pnand %p126_p3, %p120_p0 }
  0x10   :  { %117 = vset.pattern.permute.xlu1 %v146_v5  ;;  %118 = vset.pattern.permute.xlu0 %v144_v3 }
  0x11   :  { %33 = vperm.xlu1 %117, %v15_v0  }
  0x15   :  { %29 = vperm.xlu1 %117, %v14_v1  }
  0x81   :  { %v55_v8 = vpop.permute.xlu0 %54  ;;  %v51_v9 = vpop.permute.xlu1 %50 }
  0x82   :  { %v58_v10 = vmul.f32 %v55_v8, %v13_v6  ;;  %v57_v11 = vmul.f32 %v51_v9, %v12_v7 }
  0x84   :  { %v59_v12 = vsel %vm40_vm0, %v58_v10, 0.0 }
  0x85   :  { %v60_v13 = vadd.f32 %v59_v12, %v57_v11 }
  0x86   :  { %v75_v14 = vpop.permute.xlu0 %74  ;;  %v71_v15 = vpop.permute.xlu1 %70 }
  0x87   :  { %v61_v16 = vrot.slane %v60_v13, 4  ;;  %v78_v17 = vmul.f32 %v75_v14, %v13_v6  ;;  %v77_v18 = vmul.f32 %v71_v15, %v12_v7 }
  0x89   :  { %v79_v19 = vsel %vm40_vm0, %v78_v17, 0.0  ;;  %v62_v21 = vadd.f32 %v61_v16, %v60_v13 }
  0x8a   :  { %v80_v20 = vadd.f32 %v79_v19, %v77_v18 }
  0x8b   :  { %v24_v22 = vpop.permute.xlu1 %23  ;;  %v19_v25 = vpop.permute.xlu0 %18  ;;  %v63_v26 = vrot.slane %v62_v21, 2 }
  0x8c   :  { %v81_v23 = vrot.slane %v80_v20, 4  ;;  %v27_v27 = vmul.f32 %v24_v22, %v13_v6  ;;  %v26_v31 = vmul.f32 %v19_v25, %v12_v7 }
  0x8d   :  { %v64_v33 = vadd.f32 %v63_v26, %v62_v21 }
  0x8e   :  { %v82_v24 = vadd.f32 %v81_v23, %v80_v20 }
  0x8f   :  { %v65_v38 = vrot.slane %v64_v33, 1 }
  0x90   :  { %v83_v28 = vrot.slane %v82_v24, 2  ;;  %v34_v29 = vpop.permute.xlu1 %33 }
  0x91   :  { %v37_v30 = vsub.f32 %v34_v29, %v27_v27  ;;  %v66_v44 = vadd.f32 %v65_v38, %v64_v33 }
  0x92   :  { %v84_v32 = vadd.f32 %v83_v28, %v82_v24 }
  0x93   :  { %v39_v34 = vmul.f32 %v37_v30, %v13_v6  ;;  %v67_v48 = vmul.f32 %v66_v44, %v66_v44 }
  0x94   :  { %v30_v35 = vpop.permute.xlu1 %29  ;;  %v85_v36 = vrot.slane %v84_v32, 1 }
  0x95   :  { %v36_v37 = vsub.f32 %v30_v35, %v26_v31  ;;  %v41_v40 = vsel %vm40_vm0, %v39_v34, 0.0 }
  0x96   :  { %v86_v42 = vadd.f32 %v85_v36, %v84_v32 }
  0x97   :  { %v38_v39 = vmul.f32 %v36_v37, %v12_v7 }
  0x98   :  { %v87_v46 = vmul.f32 %v86_v42, %v86_v42 }
  0x99   :  { %v42_v41 = vadd.f32 %v41_v40, %v38_v39 }
  0x9a   :  { %v88_v50 = vadd.f32 %v87_v46, %v67_v48 }
  0x9b   :  { %v43_v43 = vrot.slane %v42_v41, 4 }
  0x9c   :  { %v89_v53 = vmul.f32 0.5, %v88_v50 }
  0x9d   :  { %v44_v45 = vadd.f32 %v43_v43, %v42_v41 }
  0x9f   :  { %v45_v47 = vrot.slane %v44_v45, 2 }
  0xa1   :  { %v46_v49 = vadd.f32 %v45_v47, %v44_v45 }
  0xa3   :  { %v47_v51 = vrot.slane %v46_v49, 1 }
  0xa5   :  { %v48_v52 = vadd.f32 %v47_v51, %v46_v49 }
  0xa7   :  { %v90_v54 = vadd.f32 %v89_v53, %v48_v52 }
  0xa9   :  { %91 = vst [vmem:[#allocation2] sm:$0x1] %v90_v54 }
  0xaa   :  { %130 = shalt.err (!%p127_p4)
}
  0xab   :  { %s131_s21 = scalar_lea.hbm %s192_s2, 16 }
  0xac   :  { %p132_p5 = scmp.ne.s32.totalorder %s192_s2, %s131_s21  ;;  %p135_p6 = scmp.lt.u32.totalorder %s131_s21, %s192_s2 }
  0xae   :  { %p137_p7 = pnand %p135_p6, %p132_p5 }
  0xb0   :  { %140 = shalt.err (!%p137_p7)
}
  0xb1   :  { %101 = dma.vmem_to_hbm [thread:$0]  %s99_s16, 16, %s192_s2, [#allocation3]  }
  0xb2   :  { %141 = dma.done.wait [#allocation3], 16  }
  0xb3   :  { %142 = vsyncadd [#allocation3], 4294967280 }
  0xb4   :  { %105 = vsyncpa [#allocation3], 1 }

</bundles_post_ra>
